<compile_context>
chip_gen: v7x
topology: tpu7x:2x2x1
jax: 0.10.0
libtpu: 0.0.40
codegen_flags: <defaults>
</compile_context>

<pallas_src>
import functools
import math
import numpy as np
import jax
import jax.numpy as jnp
from jax import lax
from jax.experimental import pallas as pl
from jax.experimental.pallas import tpu as pltpu

NEG_SLOPE = 0.2      # GATConv default negative_slope
MASK_BIAS = -1e30    # finite additive bias for non-edges / running-max init


def _round_up(v, m):
    return (v + m - 1) // m * m


# ---------------- pass 1: per-node feature transform + attention logits (computed once) ----
def precompute_kernel(x_ref, w_gat_ref, asrc_ref, adst_ref,
                      xf_ref, alpha_src_ref, alpha_dst_ref):
    xf = jnp.dot(x_ref[...], w_gat_ref[...], preferred_element_type=jnp.float32)   # (tb, HC)
    xf_ref[...] = xf.astype(jnp.bfloat16)                                          # V in bf16
    alpha_dst_ref[...] = jnp.dot(xf, adst_ref[...],
                                 preferred_element_type=jnp.float32)               # (tb, H)
    alpha_src_ref[...] = lax.dot_general(asrc_ref[...], xf, (((1,), (1,)), ((), ())),
                                         preferred_element_type=jnp.float32)       # (H, tb)


# ---------------- pass 2: flash-style masked edge softmax + head merge + projection --------
def attention_projection_kernel(xf_ref, asrc_ref, adst_ref, adj_ref,
                                w_proj_ref, b_fused_ref, o_ref,
                                m_ref, l_ref, acc_ref,
                                *, heads, head_dim, tk):
    j = pl.program_id(1)

    @pl.when(j == 0)
    def _init():
        m_ref[...] = jnp.full_like(m_ref, MASK_BIAS)
        l_ref[...] = jnp.zeros_like(l_ref)
        acc_ref[...] = jnp.zeros_like(acc_ref)

    src0 = pl.multiple_of(j * tk, tk)
    xf_tile = xf_ref[pl.ds(src0, tk), :]              # (tk, HC) bf16, this src tile's V
    a_src = asrc_ref[...]                             # (H, tk)  f32
    a_dst = adst_ref[...]                              # (tn, H)  f32
    edge = adj_ref[...] != 0                           # (tn, tk) bool (int8 adjacency)

    m_prev = m_ref[...]                                # (tn, H)
    l_prev = l_ref[...]                                # (tn, H)
    acc_prev = acc_ref[...]                            # (tn, HC)

    m_parts, l_parts, acc_parts = [], [], []
    for h in range(heads):                             # static unroll; temps are (tn, tk)
        hs = slice(h * head_dim, (h + 1) * head_dim)
        s = a_dst[:, h:h + 1] + a_src[h:h + 1, :]                       # (tn, tk)
        s = jnp.where(s > 0.0, s, NEG_SLOPE * s)                        # leaky_relu
        s = jnp.where(edge, s, MASK_BIAS)                               # mask non-edges
        m_old = m_prev[:, h:h + 1]
        m_new = jnp.maximum(m_old, jnp.max(s, axis=-1, keepdims=True))
        corr = jnp.exp(m_old - m_new)
        p = jnp.exp(s - m_new)                                          # unnormalized
        l_parts.append(corr * l_prev[:, h:h + 1] + jnp.sum(p, axis=-1, keepdims=True))
        pv = jnp.dot(p.astype(jnp.bfloat16), xf_tile[:, hs],
                     preferred_element_type=jnp.float32)                # (tn, C), K = tk
        acc_parts.append(corr * acc_prev[:, hs] + pv)
        m_parts.append(m_new)

    m_ref[...] = jnp.concatenate(m_parts, axis=-1)       # (tn, H)
    l_ref[...] = jnp.concatenate(l_parts, axis=-1)       # (tn, H)
    acc_ref[...] = jnp.concatenate(acc_parts, axis=-1)   # (tn, HC) lane-dense

    @pl.when(j == pl.num_programs(1) - 1)
    def _finalize():
        inv_l = pl.reciprocal(l_ref[...], approx=True)    # (tn, H), EUP slot
        acc = acc_ref[...]
        agg = jnp.concatenate(
            [acc[:, h * head_dim:(h + 1) * head_dim] * inv_l[:, h:h + 1]
             for h in range(heads)], axis=-1)             # (tn, HC) normalized GAT output
        y = jnp.dot(agg.astype(jnp.bfloat16), w_proj_ref[...],
                    preferred_element_type=jnp.float32)   # ONE K=128 projection matmul
        o_ref[...] = y + b_fused_ref[...]                  # b_fused = b_gat@W_proj + b_proj


# ---------------- wrapper ----------------
def _att_block_diag(att):
    # att: (H, C) per-head attention vector -> (H*C, H) block-diagonal matrix so that
    # (xf @ m)[:, h] == sum_c xf[:, h*C + c] * att[h, c]
    H, C = att.shape
    m = jnp.zeros((H * C, H), jnp.float32)
    for h in range(H):
        m = m.at[h * C:(h + 1) * C, h].set(att[h])
    return m


def projected_gat(x, edge_index, params, *, heads, out_channels, tn=128, tk=512):
    n, cin = x.shape
    hc = heads * out_channels
    out_dim = params["w_proj"].shape[1]

    # tile sizes: multiples of 128, no larger than the padded node count
    n128 = _round_up(n, 128)
    tn = min(max(128, (tn // 128) * 128), n128)
    tk = min(max(128, (tk // 128) * 128), n128)
    step = tn * tk // math.gcd(tn, tk)
    np_rows = _round_up(n, step)

    # dense int8 adjacency with self-loops: adj[i, j] = 1 iff edge j->i (or i == j).
    # TODO(synk): a dense 0/1 mask dedupes parallel (duplicate) edges of a multigraph.
    src, dst = edge_index[0], edge_index[1]
    adj = jnp.zeros((np_rows, np_rows), jnp.int8)
    adj = adj.at[dst, src].set(1)
    diag = jnp.arange(np_rows)
    adj = adj.at[diag, diag].set(1)          # self-loops (keeps padded rows' softmax defined)

    x_pad = jnp.pad(x, ((0, np_rows - n), (0, 0)))

    a_src_rows = _att_block_diag(params["att_src"]).T           # (H, HC)
    a_dst_cols = _att_block_diag(params["att_dst"])             # (HC, H)
    b_fused = params["b_gat"] @ params["w_proj"] + params["b_proj"]   # (1, out_dim)
    w_proj_bf16 = params["w_proj"].astype(jnp.bfloat16)

    # ---- pass 1: xf (bf16), alpha_src (H, Np), alpha_dst (Np, H) — computed once ----
    tb = 128
    xf, alpha_src, alpha_dst = pl.pallas_call(
        precompute_kernel,
        out_shape=(jax.ShapeDtypeStruct((np_rows, hc), jnp.bfloat16),
                   jax.ShapeDtypeStruct((heads, np_rows), jnp.float32),
                   jax.ShapeDtypeStruct((np_rows, heads), jnp.float32)),
        grid=(np_rows // tb,),
        in_specs=[pl.BlockSpec((tb, cin), lambda i: (i, 0)),
                  pl.BlockSpec((cin, hc), lambda i: (0, 0)),
                  pl.BlockSpec((heads, hc), lambda i: (0, 0)),
                  pl.BlockSpec((hc, heads), lambda i: (0, 0))],
        out_specs=[pl.BlockSpec((tb, hc), lambda i: (i, 0)),
                   pl.BlockSpec((heads, tb), lambda i: (0, i)),
                   pl.BlockSpec((tb, heads), lambda i: (i, 0))],
        compiler_params=pltpu.CompilerParams(dimension_semantics=("parallel",)),
    )(x_pad, params["w_gat"], a_src_rows, a_dst_cols)

    # ---- pass 2: tiled masked softmax + aggregation + fused projection ----
    vmem_bytes = (2 * np_rows * hc * 2 +             # resident xf (bf16, double-buffered)
                  2 * heads * tk * 4 +               # alpha_src tiles
                  2 * tn * heads * 4 +               # alpha_dst tiles
                  2 * tn * tk * 1 +                  # adjacency tiles (int8)
                  2 * hc * out_dim * 2 +             # W_proj (bf16)
                  2 * out_dim * 4 +                  # fused bias
                  2 * tn * out_dim * 4 +             # output tiles
                  tn * hc * 4 + 2 * tn * 128 * 4 +   # acc / m / l scratch (lane-padded)
                  8 * tn * tk * 4)                   # per-head (tn, tk) temporaries
    vmem_limit = int(min(max(2 * vmem_bytes, 16 << 20), 48 << 20))

    kern = functools.partial(attention_projection_kernel,
                             heads=heads, head_dim=out_channels, tk=tk)
    y = pl.pallas_call(
        kern,
        out_shape=jax.ShapeDtypeStruct((np_rows, out_dim), jnp.float32),
        grid=(np_rows // tn, np_rows // tk),
        in_specs=[pl.BlockSpec((np_rows, hc), lambda i, j: (0, 0)),   # xf (resident)
                  pl.BlockSpec((heads, tk), lambda i, j: (0, j)),     # alpha_src tile
                  pl.BlockSpec((tn, heads), lambda i, j: (i, 0)),     # alpha_dst tile
                  pl.BlockSpec((tn, tk), lambda i, j: (i, j)),        # adjacency tile (int8)
                  pl.BlockSpec((hc, out_dim), lambda i, j: (0, 0)),   # W_proj (bf16)
                  pl.BlockSpec((1, out_dim), lambda i, j: (0, 0))],   # fused bias
        out_specs=pl.BlockSpec((tn, out_dim), lambda i, j: (i, 0)),
        scratch_shapes=[pltpu.VMEM((tn, heads), jnp.float32),   # running max  m
                        pltpu.VMEM((tn, heads), jnp.float32),   # running sum  l
                        pltpu.VMEM((tn, hc), jnp.float32)],     # unnormalized accumulator
        compiler_params=pltpu.CompilerParams(
            dimension_semantics=("parallel", "arbitrary"),
            vmem_limit_bytes=vmem_limit),
    )(xf, alpha_src, alpha_dst, adj, w_proj_bf16, b_fused)

    return y[:n]


# ---------------- pure-JAX reference (same dense formulation, unfused f32 math) ------------
def reference_projected_gat(x, adj, params, heads, out_channels):
    hc = heads * out_channels
    xf = (x @ params["w_gat"]).reshape(-1, heads, out_channels)
    a_src = (xf * params["att_src"][None]).sum(-1)          # (N, H)
    a_dst = (xf * params["att_dst"][None]).sum(-1)          # (N, H)
    s = a_dst[:, None, :] + a_src[None, :, :]               # (dst, src, H)
    s = jnp.where(s > 0.0, s, NEG_SLOPE * s)
    s = jnp.where(adj[..., None] > 0.0, s, -jnp.inf)
    p = jax.nn.softmax(s, axis=1)
    out = jnp.einsum("ijh,jhc->ihc", p, xf).reshape(-1, hc) + params["b_gat"]
    return out @ params["w_proj"] + params["b_proj"]


# ---------------- deterministic parameter init ----------------
def init_params(key, cin, heads, out_channels, out_dim, scale=0.1):
    hc = heads * out_channels
    ks = jax.random.split(key, 6)
    return {
        "w_gat":   jax.random.normal(ks[0], (cin, hc), jnp.float32) * scale,
        "att_src": jax.random.normal(ks[1], (heads, out_channels), jnp.float32) * scale,
        "att_dst": jax.random.normal(ks[2], (heads, out_channels), jnp.float32) * scale,
        "b_gat":   jax.random.normal(ks[3], (1, hc), jnp.float32) * scale,
        "w_proj":  jax.random.normal(ks[4], (hc, out_dim), jnp.float32) * scale,
        "b_proj":  jax.random.normal(ks[5], (1, out_dim), jnp.float32) * scale,
    }


if __name__ == "__main__":
    key = jax.random.PRNGKey(0)
    k_x, k_p = jax.random.split(key)

    n_nodes, in_channels = 200, 16
    heads, out_channels, out_dim = 4, 32, 128      # heads*out_channels = 128 (lane-dense)

    x = jax.random.normal(k_x, (n_nodes, in_channels), jnp.float32)

    # deterministic simple directed graph: edges i -> (i + k) % N for a few offsets
    offs = np.array([1, 2, 5, 11, 29], dtype=np.int64)
    src_np = np.repeat(np.arange(n_nodes), len(offs))
    dst_np = (src_np + np.tile(offs, n_nodes)) % n_nodes
    edge_index = jnp.asarray(np.stack([src_np, dst_np]).astype(np.int32))   # (2, E)

    params = init_params(k_p, in_channels, heads, out_channels, out_dim)

    # small tiles so the test exercises multiple blocks on BOTH grid axes
    y = projected_gat(x, edge_index, params, heads=heads, out_channels=out_channels,
                      tn=128, tk=128)
    y = jax.block_until_ready(y)

    assert y.shape == (n_nodes, out_dim)
    assert bool(jnp.all(jnp.isfinite(y)))

    # validate against a pure-JAX f32 reference on the same adjacency (with self-loops)
    adj_ref = jnp.zeros((n_nodes, n_nodes), jnp.float32).at[edge_index[1], edge_index[0]].set(1.0)
    adj_ref = adj_ref.at[jnp.arange(n_nodes), jnp.arange(n_nodes)].set(1.0)
    y_ref = reference_projected_gat(x, adj_ref, params, heads, out_channels)
    np.testing.assert_allclose(np.asarray(y), np.asarray(y_ref), rtol=2e-2, atol=2e-2)

    print("KERNEL_OK")
</pallas_src>

<mosaic_0001>
module attributes {stable_mosaic.version = 11 : i64} {
  func.func @precompute_kernel(%arg0: i32, %arg1: memref<128x16xf32, #tpu.memory_space<vmem>>, %arg2: memref<16x128xf32, #tpu.memory_space<vmem>>, %arg3: memref<4x128xf32, #tpu.memory_space<vmem>>, %arg4: memref<128x4xf32, #tpu.memory_space<vmem>>, %arg5: memref<128x128xbf16, #tpu.memory_space<vmem>>, %arg6: memref<4x128xf32, #tpu.memory_space<vmem>>, %arg7: memref<128x4xf32, #tpu.memory_space<vmem>>) attributes {dimension_semantics = [#tpu.dimension_semantics<parallel>], iteration_bounds = array<i64: 2>, scalar_prefetch = 0 : i64, scratch_operands = 0 : i64, tpu.core_type = #tpu.core_type<tc>, window_params = [{transform_indices = @transform_0, window_bounds = array<i64: 128, 16>}, {pipeline_mode = #tpu.pipeline_mode<synchronous>, transform_indices = @transform_1, window_bounds = array<i64: 16, 128>}, {pipeline_mode = #tpu.pipeline_mode<synchronous>, transform_indices = @transform_2, window_bounds = array<i64: 4, 128>}, {pipeline_mode = #tpu.pipeline_mode<synchronous>, transform_indices = @transform_3, window_bounds = array<i64: 128, 4>}, {transform_indices = @transform_4, window_bounds = array<i64: 128, 128>}, {transform_indices = @transform_5, window_bounds = array<i64: 4, 128>}, {transform_indices = @transform_6, window_bounds = array<i64: 128, 4>}]} {
    %c0 = arith.constant 0 : index
    %c0_0 = arith.constant 0 : index
    %0 = vector.load %arg1[%c0, %c0_0] : memref<128x16xf32, #tpu.memory_space<vmem>>, vector<128x16xf32>
    %c0_1 = arith.constant 0 : index
    %c0_2 = arith.constant 0 : index
    %1 = vector.load %arg2[%c0_1, %c0_2] : memref<16x128xf32, #tpu.memory_space<vmem>>, vector<16x128xf32>
    %cst = arith.constant dense<0.000000e+00> : vector<128x128xf32>
    %2 = tpu.matmul %0, %1, %cst {dimension_numbers = #tpu.dot_dimension_numbers<[1], [0], [0], [1], [0, 0, 1, 1], [], []>} : vector<128x16xf32>, vector<16x128xf32>, vector<128x128xf32> -> vector<128x128xf32>
    %3 = arith.truncf %2 : vector<128x128xf32> to vector<128x128xbf16>
    %c0_3 = arith.constant 0 : index
    %c0_4 = arith.constant 0 : index
    %4 = vector.load %arg5[%c0_3, %c0_4] : memref<128x128xbf16, #tpu.memory_space<vmem>>, vector<128x128xbf16>
    tpu.vector_store %arg5[%c0_3, %c0_4], %3 {strides = array<i32>} : memref<128x128xbf16, #tpu.memory_space<vmem>>, vector<128x128xbf16>,
    %c0_5 = arith.constant 0 : index
    %c0_6 = arith.constant 0 : index
    %5 = vector.load %arg4[%c0_5, %c0_6] : memref<128x4xf32, #tpu.memory_space<vmem>>, vector<128x4xf32>
    %cst_7 = arith.constant dense<0.000000e+00> : vector<128x4xf32>
    %6 = tpu.matmul %2, %5, %cst_7 {dimension_numbers = #tpu.dot_dimension_numbers<[1], [0], [0], [1], [0, 0, 1, 1], [], []>} : vector<128x128xf32>, vector<128x4xf32>, vector<128x4xf32> -> vector<128x4xf32>
    %c0_8 = arith.constant 0 : index
    %c0_9 = arith.constant 0 : index
    %7 = vector.load %arg7[%c0_8, %c0_9] : memref<128x4xf32, #tpu.memory_space<vmem>>, vector<128x4xf32>
    tpu.vector_store %arg7[%c0_8, %c0_9], %6 {strides = array<i32>} : memref<128x4xf32, #tpu.memory_space<vmem>>, vector<128x4xf32>,
    %c0_10 = arith.constant 0 : index
    %c0_11 = arith.constant 0 : index
    %8 = vector.load %arg3[%c0_10, %c0_11] : memref<4x128xf32, #tpu.memory_space<vmem>>, vector<4x128xf32>
    %cst_12 = arith.constant dense<0.000000e+00> : vector<4x128xf32>
    %9 = tpu.matmul %8, %2, %cst_12 {dimension_numbers = #tpu.dot_dimension_numbers<[1], [1], [0], [0], [0, 0, 1, 0], [], []>} : vector<4x128xf32>, vector<128x128xf32>, vector<4x128xf32> -> vector<4x128xf32>
    %c0_13 = arith.constant 0 : index
    %c0_14 = arith.constant 0 : index
    %10 = vector.load %arg6[%c0_13, %c0_14] : memref<4x128xf32, #tpu.memory_space<vmem>>, vector<4x128xf32>
    tpu.vector_store %arg6[%c0_13, %c0_14], %9 {strides = array<i32>} : memref<4x128xf32, #tpu.memory_space<vmem>>, vector<4x128xf32>,
    return
  }
  func.func @transform_0(%arg0: i32) -> (i32, i32) {
    %c0_i32 = arith.constant 0 : i32
    %c0_i32_0 = arith.constant 0 : i32
    return %arg0, %c0_i32 : i32, i32
  }
  func.func @transform_1(%arg0: i32) -> (i32, i32) {
    %c0_i32 = arith.constant 0 : i32
    %c0_i32_0 = arith.constant 0 : i32
    %c0_i32_1 = arith.constant 0 : i32
    return %c0_i32, %c0_i32_0 : i32, i32
  }
  func.func @transform_2(%arg0: i32) -> (i32, i32) {
    %c0_i32 = arith.constant 0 : i32
    %c0_i32_0 = arith.constant 0 : i32
    %c0_i32_1 = arith.constant 0 : i32
    return %c0_i32, %c0_i32_0 : i32, i32
  }
  func.func @transform_3(%arg0: i32) -> (i32, i32) {
    %c0_i32 = arith.constant 0 : i32
    %c0_i32_0 = arith.constant 0 : i32
    %c0_i32_1 = arith.constant 0 : i32
    return %c0_i32, %c0_i32_0 : i32, i32
  }
  func.func @transform_4(%arg0: i32) -> (i32, i32) {
    %c0_i32 = arith.constant 0 : i32
    %c0_i32_0 = arith.constant 0 : i32
    return %arg0, %c0_i32 : i32, i32
  }
  func.func @transform_5(%arg0: i32) -> (i32, i32) {
    %c0_i32 = arith.constant 0 : i32
    %c0_i32_0 = arith.constant 0 : i32
    return %c0_i32, %arg0 : i32, i32
  }
  func.func @transform_6(%arg0: i32) -> (i32, i32) {
    %c0_i32 = arith.constant 0 : i32
    %c0_i32_0 = arith.constant 0 : i32
    return %arg0, %c0_i32 : i32, i32
  }
}

</mosaic_0001>

<bundles_post_ra>
// kernel: tpu_custom_call.1
= control target key start
LH: loop header
LB: loop body
LE: loop exit
PB: predicated region body
PF: predicated region fallthrough
CT: control target
= control target key end

     0   :  { %12 = vsyncpa [#allocation3], 0  ;;  %s1815_s0 = inlined_call_operand.vmem [shape: f32[256,16], index: 0, kind: input, shape index: {}]   ;;  %s1816_s1 = inlined_call_operand.vmem [shape: f32[16,128], index: 1, kind: input, shape index: {}]   ;;  %s1817_s2 = inlined_call_operand.vmem [shape: f32[4,128], index: 2, kind: input, shape index: {}]   ;;  %s1818_s3 = inlined_call_operand.vmem [shape: f32[128,4], index: 3, kind: input, shape index: {}]   ;;  %s1819_s4 = inlined_call_operand.hbm [shape: bf16[256,128], index: 4, kind: output, shape index: {0}]   ;;  %s1820_s5 = inlined_call_operand.hbm [shape: f32[4,256], index: 5, kind: output, shape index: {1}]   ;;  %s1821_s6 = inlined_call_operand.vmem [shape: f32[256,4], index: 6, kind: output, shape index: {2}]  }
   0x1   :  { %14 = vsyncpa [#allocation3 + $0x1], 0 }
   0x2   :  { %15 = vsyncpa [#allocation5], 0 }
   0x3   :  { %17 = vsyncpa [#allocation5 + $0x1], 0  ;;  %s1525_s21 = smov 0   ;;  %s1527_s22 = smov 0  }
   0x4   :  { %s1529_s23 = smov 0   ;;  %s1531_s24 = smov 0  }
   0x5 LB: > { %s1546_s25 = sadd.s32 4294967295, %s1481_s24   ;;  %s979_s26 = sadd.s32 4294967294, %s1481_s24   ;;  %s1481_s24 = sphi %s1531_s24, %s1827_s24   ;;  %s1477_s23 = sphi %s1529_s23, %s1826_s23   ;;  %s1473_s22 = sphi %s1527_s22, %s1825_s22   ;;  %s1469_s21 = sphi %s1525_s21, %s1824_s21  }
   0x6   : > { %s1550_s27 = sadd.s32 1, %s1481_s24   ;;  %s119_s28 = sadd.s32 1, %s1477_s23 }
   0x7   : > { %s116_s29 = ssub.s32 %s1481_s24, %s1550_s27  ;;  %p129_p0 = scmp.ne.s32.totalorder %s1477_s23, %s1473_s22 }
   0x8   : > { %p117_p1 = scmp.eq.s32.totalorder %s116_s29, 0  ;;  %p130_p2 = scmp.eq.s32.totalorder %s1546_s25, 1 }
   0x9   : > { %p135_p3 = scmp.ne.s32.totalorder %s1473_s22, %s1469_s21  ;;  %p136_p4 = scmp.eq.s32.totalorder %s979_s26, 1 }
   0xa   : > { %s1561_s30 = scalar_select %p117_p1, %s1477_s23, %s119_s28  }
   0xb   : > { %p1563_p5 = por %p130_p2, %p129_p0  ;;  %p1567_p6 = por %p136_p4, %p135_p3 }
   0xc   : > { %p982_p7 = scmp.ge.s32.totalorder %s1481_s24, 1  ;;  %p224_p8 = scmp.lt.s32.totalorder %s1481_s24, 3 }
   0xe   : > { %p225_p9 = pnand %p982_p7, %p224_p8 }
   0xf   : > { %v293_v0 = vld [vmem:[%s1816_s1] sm:$0xff] (!%p225_p9)  ;;  %v294_v1 = vld [vmem:[%s1816_s1 + $0x8] sm:$0xff] (!%p225_p9)  ;;  %s985_s13 = sshll.u32 (!%p225_p9), %s1546_s25, 4  ;;  %v571_v6 = vld [vmem:[%s1818_s3 + $0x10] sm:$0xff] (!%p225_p9)  ;;  %vm295_vm0 = vcmask (!%p225_p9), 130048   ;;  %v1483_v43 = vmov (!%p225_p9), 0.0|0.0  }
  0x10   : > { %228 = sbr.rel (%p225_p9) target bundleno = 532 (0x214), region = 36  ;;  %v569_v2 = vld [vmem:[%s1818_s3] sm:$0xff] (!%p225_p9)  ;;  %v1278_v3 = vpack.c.bf16 (!%p225_p9), %v294_v1, %v293_v0  ;;  %p265_p10 = scmp.lt.s32.totalorder (!%p225_p9), %s985_s13, 31  ;;  %v570_v4 = vld [vmem:[%s1818_s3 + $0x8] sm:$0xff] (!%p225_p9)  ;;  %v572_v7 = vld [vmem:[%s1818_s3 + $0x18] sm:$0xff] (!%p225_p9)  ;;  %1314 = vmatprep.subr.bf16.mxu0 (!%p225_p9), %v1483_v43  ;;  %vm1484_vm1 = vmmov (!%p225_p9), 0  }
  0x11   : > { %v1282_v5 = vpack.c.bf16 (!%p225_p9), %v570_v4, %v569_v2  ;;  %v1286_v11 = vpack.c.bf16 (!%p225_p9), %v572_v7, %v571_v6  ;;  %v573_v12 = vld [vmem:[%s1818_s3 + $0x20] sm:$0xff] (!%p225_p9)  ;;  %v574_v13 = vld [vmem:[%s1818_s3 + $0x28] sm:$0xff] (!%p225_p9)  ;;  %v575_v17 = vld [vmem:[%s1818_s3 + $0x30] sm:$0xff] (!%p225_p9)  ;;  %v1485_v44 = vmov (!%p225_p9), 0.0   ;;  %s1672_s11 = sand.u32 (!%p225_p9), 1, %s1473_s22   ;;  %s1044_s16 = sshll.u32 (!%p225_p9), %s1546_s25, 10 }
  0x12   : > { %1279 = vmatprep.subr.bf16.mxu1 (!%p225_p9), %v1278_v3  ;;  %v1290_v16 = vpack.c.bf16 (!%p225_p9), %v574_v13, %v573_v12  ;;  %v576_v18 = vld [vmem:[%s1818_s3 + $0x38] sm:$0xff] (!%p225_p9)  ;;  %v577_v22 = vld [vmem:[%s1818_s3 + $0x40] sm:$0xff] (!%p225_p9)  ;;  %v578_v23 = vld [vmem:[%s1818_s3 + $0x48] sm:$0xff] (!%p225_p9)  ;;  %1275 = vmatprep.mubr.msk.f32.mxu0 (!%p225_p9), %vm1484_vm1, %v1485_v44  ;;  %s983_s12 = sshll.u32 (!%p225_p9), %s1672_s11, 6  ;;  %s1699_s19 = scalar_lea.hbm (!%p225_p9), %s1819_s4, %s1044_s16 }
  0x13   : > { %1281 = vmatpush3.bf16.msra.mxu1 (!%p225_p9), %v1278_v3  ;;  %v1294_v21 = vpack.c.bf16 (!%p225_p9), %v576_v18, %v575_v17  ;;  %v1298_v26 = vpack.c.bf16 (!%p225_p9), %v578_v23, %v577_v22  ;;  %v579_v27 = vld [vmem:[%s1818_s3 + $0x50] sm:$0xff] (!%p225_p9)  ;;  %v580_v28 = vld [vmem:[%s1818_s3 + $0x58] sm:$0xff] (!%p225_p9)  ;;  %v581_v32 = vld [vmem:[%s1818_s3 + $0x60] sm:$0xff] (!%p225_p9)  ;;  %s820_s26 = scalar_lea.sflag (!%p225_p9), [#allocation3], %s1672_s11  ;;  %s1486_s9 = smov (!%p225_p9), [#allocation2]  }
  0x14   : > { %1283 = vmatprep.subr.bf16.mxu1 (!%p225_p9), %v1282_v5  ;;  %v1302_v31 = vpack.c.bf16 (!%p225_p9), %v580_v28, %v579_v27  ;;  %v582_v33 = vld [vmem:[%s1818_s3 + $0x68] sm:$0xff] (!%p225_p9)  ;;  %v583_v37 = vld [vmem:[%s1818_s3 + $0x70] sm:$0xff] (!%p225_p9)  ;;  %v584_v38 = vld [vmem:[%s1818_s3 + $0x78] sm:$0xff] (!%p225_p9) }
  0x15   : > { %v1306_v36 = vpack.c.bf16 (!%p225_p9), %v582_v33, %v581_v32  ;;  %v1310_v41 = vpack.c.bf16 (!%p225_p9), %v584_v38, %v583_v37 }
  0x17   : > { %s1829_s13 = smov (!%p265_p10, %s985_s13), 31 }
  0x18   : > { %s986_s28 = sshll.u32 %s1829_s13, 3 }
  0x19   : > { %s1600_s10 = scalar_lea.vmem %s1815_s0, %s986_s28 }
  0x1a   : > { %v277_v8 = vld [vmem:[%s1600_s10] sm:$0xff]  ;;  %v278_v9 = vld [vmem:[%s1600_s10 + $0x8] sm:$0xff]  ;;  %v279_v10 = vld [vmem:[%s1600_s10 + $0x10] sm:$0xff] }
  0x1b   : > { %1163 = vmatprep.mubr.msk.f32.mxu1 %vm295_vm0, %v277_v8  ;;  %v280_v14 = vld [vmem:[%s1600_s10 + $0x18] sm:$0xff]  ;;  %v281_v15 = vld [vmem:[%s1600_s10 + $0x20] sm:$0xff]  ;;  %v282_v19 = vld [vmem:[%s1600_s10 + $0x28] sm:$0xff] }
  0x1c   : > { %1164 = vmatmul.mubr.msk.f32.vlgmr.msra.gmra.mrb[0].mxu1 %vm295_vm0, %v278_v9  ;;  %v283_v20 = vld [vmem:[%s1600_s10 + $0x30] sm:$0xff]  ;;  %v284_v24 = vld [vmem:[%s1600_s10 + $0x38] sm:$0xff]  ;;  %v285_v25 = vld [vmem:[%s1600_s10 + $0x40] sm:$0xff] }
  0x1d   : > { %1166 = vmatprep.mubr.msk.f32.mxu1 %vm295_vm0, %v279_v10  ;;  %1285 = vmatpush3.bf16.msra.mxu1 %v1282_v5  ;;  %v286_v29 = vld [vmem:[%s1600_s10 + $0x48] sm:$0xff]  ;;  %v287_v30 = vld [vmem:[%s1600_s10 + $0x50] sm:$0xff]  ;;  %v288_v34 = vld [vmem:[%s1600_s10 + $0x58] sm:$0xff] }
  0x1e   : > { %1287 = vmatprep.subr.bf16.mxu1 %v1286_v11  ;;  %v289_v35 = vld [vmem:[%s1600_s10 + $0x60] sm:$0xff]  ;;  %v290_v39 = vld [vmem:[%s1600_s10 + $0x68] sm:$0xff]  ;;  %v291_v40 = vld [vmem:[%s1600_s10 + $0x70] sm:$0xff] }
  0x1f   : > { %v292_v42 = vld [vmem:[%s1600_s10 + $0x78] sm:$0xff]  ;;  %s1675_s10 = scalar_lea.vmem [#allocation2], %s983_s12  ;;  %v747_v5 = vld [vmem:[%s1817_s2] sm:$0xf]  ;;  %s1391_s12 = sshll.u32 %s1486_s9, 4  ;;  %s1392_s12 = int_to_ptr.vmem [resolvable:$false] %s1391_s12 }
  0x20   : > { %1167 = vmatmul.mubr.msk.f32.gmra.mrb[2].mxu1 %vm295_vm0, %v280_v14  ;;  %s843_s20 = sshll.u32 %s1675_s10, 4  ;;  %s1393_s14 = scalar_lea.vmem %s1392_s12, 2048  ;;  %s1702_s20 = int_to_ptr.vmem [resolvable:$true] %s843_s20 }
  0x21   : > { %1169 = vmatprep.mubr.msk.f32.mxu1 %vm295_vm0, %v281_v15  ;;  %1289 = vmatpush3.bf16.msra.mxu1 %v1286_v11  ;;  %s1387_s29 = scalar_lea.vmem %s1702_s20, 1024  ;;  %p1394_p0 = scmp.lt.s32.totalorder %s1702_s20, %s1392_s12 }
  0x22   : > { %1291 = vmatprep.subr.bf16.mxu1 %v1290_v16  ;;  %p1388_p11 = scmp.ne.s32.totalorder %s1702_s20, %s1387_s29  ;;  %p1395_p1 = scmp.lt.s32.totalorder %s1393_s14, %s1387_s29 }
  0x24   : > { %1170 = vmatmul.mubr.msk.f32.gmra.mrb[4].mxu1 %vm295_vm0, %v282_v19  ;;  %p1389_p12 = pnand %p1388_p11, %p1563_p5  ;;  %p1396_p2 = por %p1395_p1, %p1394_p0 }
  0x25   : > { %1172 = vmatprep.mubr.msk.f32.mxu1 %vm295_vm0, %v283_v20  ;;  %1293 = vmatpush3.bf16.msra.mxu1 %v1290_v16 }
  0x26   : > { %1295 = vmatprep.subr.bf16.mxu1 %v1294_v21  ;;  %p1390_p13 = pneg %p1389_p12 }
  0x28   : > { %1173 = vmatmul.mubr.msk.f32.gmra.mrb[6].mxu1 %vm295_vm0, %v284_v24  ;;  %p1397_p3 = pnand %p1396_p2, %p1390_p13 }
  0x29   : > { %1175 = vmatprep.mubr.msk.f32.mxu1 %vm295_vm0, %v285_v25  ;;  %1297 = vmatpush3.bf16.msra.mxu1 %v1294_v21 }
  0x2a   : > { %1299 = vmatprep.subr.bf16.mxu1 %v1298_v26 }
  0x2c   : > { %1176 = vmatmul.mubr.msk.f32.gmra.mrb[8].mxu1 %vm295_vm0, %v286_v29 }
  0x2d   : > { %1178 = vmatprep.mubr.msk.f32.mxu1 %vm295_vm0, %v287_v30  ;;  %1301 = vmatpush3.bf16.msra.mxu1 %v1298_v26 }
  0x2e   : > { %1303 = vmatprep.subr.bf16.mxu1 %v1302_v31 }
  0x30   : > { %1179 = vmatmul.mubr.msk.f32.gmra.mrb[10].mxu1 %vm295_vm0, %v288_v34 }
  0x31   : > { %1181 = vmatprep.mubr.msk.f32.mxu1 %vm295_vm0, %v289_v35  ;;  %1305 = vmatpush3.bf16.msra.mxu1 %v1302_v31 }
  0x32   : > { %1307 = vmatprep.subr.bf16.mxu1 %v1306_v36 }
  0x34   : > { %1182 = vmatmul.mubr.msk.f32.gmra.mrb[12].mxu1 %vm295_vm0, %v290_v39 }
  0x35   : > { %1184 = vmatprep.mubr.msk.f32.mxu1 %vm295_vm0, %v291_v40  ;;  %1309 = vmatpush3.bf16.msra.mxu1 %v1306_v36 }
  0x36   : > { %1311 = vmatprep.subr.bf16.mxu1 %v1310_v41 }
  0x38   : > { %1185 = vmatmul.mubr.msk.f32.gmra.mrb[14].mxu1 %vm295_vm0, %v292_v42 }
  0x39   : > { %1313 = vmatpush3.bf16.msra.mxu1 %v1310_v41 }
  0xef   : > { %v1165_v45 = vpop.f32.mrb[0].mxu1 }
  0xf0   : > { %v410_v46 = vpop.f32.mrb[1].mxu1 }
  0xf1   : > { %1219 = vmatprep.mubr.f32.mxu1 %v410_v46  ;;  %v1048_v47 = vpack.c.bf16 %v1165_v45, %v410_v46 }
  0xf2   : > { %1220 = vmatmul.mubr.f32.vlgmr.msra.gmra.mrb[16].mxu1 %v1165_v45 }
  0xf3   : > { %1049 = vst [vmem:[%s1675_s10] sm:$0xff] %v1048_v47   ;;  %1316 = vmatpush3.bf16.xpose.msra.mxu0 %v1048_v47  ;;  %v1168_v48 = vpop.f32.mrb[2].mxu1 }
  0xf4   : > { %v420_v49 = vpop.f32.mrb[3].mxu1  ;;  %1317 = vmatprep.subr.bf16.mxu0 %v1483_v43 }
  0xf5   : > { %v1053_v50 = vpack.c.bf16 %v1168_v48, %v420_v49  ;;  %1222 = vmatprep.mubr.f32.mxu1 %v420_v49 }
  0xf6   : > { %1223 = vmatmul.mubr.f32.gmra.mrb[18].mxu1 %v1168_v48 }
  0xf7   : > { %1085 = vst [vmem:[%s1675_s10 + $0x8] sm:$0xff] %v1053_v50   ;;  %v1171_v51 = vpop.f32.mrb[4].mxu1 }
  0xf8   : > { %v430_v52 = vpop.f32.mrb[5].mxu1 }
  0xf9   : > { %v1058_v53 = vpack.c.bf16 %v1171_v51, %v430_v52  ;;  %1225 = vmatprep.mubr.f32.mxu1 %v430_v52 }
  0xfa   : > { %1226 = vmatmul.mubr.f32.gmra.mrb[20].mxu1 %v1171_v51 }
  0xfb   : > { %1319 = vmatpush3.bf16.xpose.msra.mxu0 %v1053_v50  ;;  %1086 = vst [vmem:[%s1675_s10 + $0x10] sm:$0xff] %v1058_v53   ;;  %v1174_v54 = vpop.f32.mrb[6].mxu1 }
  0xfc   : > { %1320 = vmatprep.subr.bf16.mxu0 %v1483_v43  ;;  %v440_v55 = vpop.f32.mrb[7].mxu1 }
  0xfd   : > { %v1063_v56 = vpack.c.bf16 %v1174_v54, %v440_v55  ;;  %1228 = vmatprep.mubr.f32.mxu1 %v440_v55 }
  0xfe   : > { %1229 = vmatmul.mubr.f32.gmra.mrb[22].mxu1 %v1174_v54 }
  0xff   : > { %1087 = vst [vmem:[%s1675_s10 + $0x18] sm:$0xff] %v1063_v56   ;;  %v1177_v57 = vpop.f32.mrb[8].mxu1 }
 0x100   : > { %v450_v58 = vpop.f32.mrb[9].mxu1 }
 0x101   : > { %v1068_v59 = vpack.c.bf16 %v1177_v57, %v450_v58  ;;  %1231 = vmatprep.mubr.f32.mxu1 %v450_v58 }
 0x102   : > { %1232 = vmatmul.mubr.f32.gmra.mrb[24].mxu1 %v1177_v57 }
 0x103   : > { %1322 = vmatpush3.bf16.xpose.msra.mxu0 %v1058_v53  ;;  %1088 = vst [vmem:[%s1675_s10 + $0x20] sm:$0xff] %v1068_v59   ;;  %v1180_v60 = vpop.f32.mrb[10].mxu1 }
 0x104   : > { %1323 = vmatprep.subr.bf16.mxu0 %v1483_v43  ;;  %v460_v61 = vpop.f32.mrb[11].mxu1 }
 0x105   : > { %v1073_v62 = vpack.c.bf16 %v1180_v60, %v460_v61  ;;  %1234 = vmatprep.mubr.f32.mxu1 %v460_v61 }
 0x106   : > { %1235 = vmatmul.mubr.f32.gmra.mrb[26].mxu1 %v1180_v60 }
 0x107   : > { %1089 = vst [vmem:[%s1675_s10 + $0x28] sm:$0xff] %v1073_v62   ;;  %v1183_v63 = vpop.f32.mrb[12].mxu1 }
 0x108   : > { %v470_v0 = vpop.f32.mrb[13].mxu1 }
 0x109   : > { %v1078_v1 = vpack.c.bf16 %v1183_v63, %v470_v0  ;;  %1237 = vmatprep.mubr.f32.mxu1 %v470_v0 }
 0x10a   : > { %1238 = vmatmul.mubr.f32.gmra.mrb[28].mxu1 %v1183_v63 }
 0x10b   : > { %1325 = vmatpush3.bf16.xpose.msra.mxu0 %v1063_v56  ;;  %1090 = vst [vmem:[%s1675_s10 + $0x30] sm:$0xff] %v1078_v1   ;;  %v1186_v2 = vpop.f32.mrb[14].mxu1 }
 0x10c   : > { %1326 = vmatprep.subr.bf16.mxu0 %v1483_v43  ;;  %v480_v3 = vpop.f32.mrb[15].mxu1 }
 0x10d   : > { %v1083_v4 = vpack.c.bf16 %v1186_v2, %v480_v3  ;;  %1240 = vmatprep.mubr.f32.mxu1 %v480_v3 }
 0x10e   : > { %1241 = vmatmul.mubr.f32.gmra.mrb[30].mxu1 %v1186_v2 }
 0x10f   : > { %1091 = vst [vmem:[%s1675_s10 + $0x38] sm:$0xff] %v1083_v4  }
 0x113   : > { %1328 = vmatpush3.bf16.xpose.msra.mxu0 %v1068_v59 }
 0x114   : > { %1329 = vmatprep.subr.bf16.mxu0 %v1483_v43 }
 0x11b   : > { %1331 = vmatpush3.bf16.xpose.msra.mxu0 %v1073_v62 }
 0x11c   : > { %1332 = vmatprep.subr.bf16.mxu0 %v1483_v43 }
 0x123   : > { %1334 = vmatpush3.bf16.xpose.msra.mxu0 %v1078_v1 }
 0x124   : > { %1335 = vmatprep.subr.bf16.mxu0 %v1483_v43 }
 0x12b   : > { %1337 = vmatpush3.bf16.xpose.msra.mxu0 %v1083_v4 }
 0x132   : > { %1276 = vmatmul.mubr.f32.vlgmr.msra.gmra.mrb[0].mxu0 %v747_v5 }
 0x133   : > { %1400 = shalt.err (!%p1397_p3)
}
 0x134   : > { %s1401_s10 = scalar_lea.hbm %s1699_s19, 1024  ;;  %s1405_s17 = scalar_lea.hbm %s1819_s4, 2048 }
 0x135   : > { %p1402_p4 = scmp.ne.s32.totalorder %s1699_s19, %s1401_s10  ;;  %p1406_p9 = scmp.lt.u32.totalorder %s1699_s19, %s1819_s4 }
 0x136   : > { %p1407_p10 = scmp.lt.u32.totalorder %s1405_s17, %s1401_s10  ;;  %p1409_p12 = scmp.lt.u32.totalorder %s1401_s10, %s1699_s19 }
 0x137   : > { %p1403_p7 = pnand %p1402_p4, %p1563_p5 }
 0x138   : > { %p1408_p11 = por %p1407_p10, %p1406_p9 }
 0x139   : > { %p1404_p8 = pneg %p1403_p7 }
 0x13a   : > { %p1410_p13 = por %p1409_p12, %p1408_p11 }
 0x13c   : > { %p1411_p0 = pnand %p1410_p13, %p1404_p8 }
 0x13e   : > { %1414 = shalt.err (!%p1411_p0)
}
 0x13f   : > { %s1487_s29 = smov 64   ;;  %s1488_s12 = smov 4   ;;  %vm730_vm2 = vcmask 31744  }
 0x140   : > { %1338 = dma.vmem_to_hbm [thread:$0]  (%p1563_p5), %s1702_s20, 1024, %s1699_s19, %s820_s26, %s1487_s29, %s1487_s29, %s1488_s12  }
 0x141   : > { %s1733_s16 = scalar_lea.vmem %s1821_s6, %s986_s28  ;;  %s984_s13 = sshll.u32 %s1672_s11, 2 }
 0x142   : > { %s256_s28 = scalar_lea.vmem [#allocation4], %s984_s13  ;;  %s1025_s20 = sshll.u32 %s1546_s25, 6 }
 0x143   : > { %s859_s19 = sshll.u32 %s256_s28, 4  ;;  %s1774_s17 = scalar_lea.hbm %s1820_s5, %s1025_s20  ;;  %s1769_s19 = int_to_ptr.vmem [resolvable:$true] %s859_s19 }
 0x144   : > { %s825_s18 = scalar_lea.sflag [#allocation5], %s1672_s11  ;;  %s1415_s9 = scalar_lea.vmem %s1769_s19, 64 }
 0x145   : > { %p1416_p1 = scmp.ne.s32.totalorder %s1769_s19, %s1415_s9  ;;  %s1489_s25 = smov [#allocation4]  }
 0x146   : > { %s1419_s29 = sshll.u32 %s1489_s25, 4  ;;  %s1420_s29 = int_to_ptr.vmem [resolvable:$false] %s1419_s29 }
 0x147   : > { %p1417_p2 = pnand %p1416_p1, %p1563_p5  ;;  %s1421_s12 = scalar_lea.vmem %s1420_s29, 128 }
 0x148   : > { %p1422_p4 = scmp.lt.s32.totalorder %s1769_s19, %s1420_s29  ;;  %p1423_p7 = scmp.lt.s32.totalorder %s1421_s12, %s1415_s9 }
 0x149   : > { %p1418_p3 = pneg %p1417_p2 }
 0x14a   : > { %p1424_p8 = por %p1423_p7, %p1422_p4 }
 0x14c   : > { %p1425_p9 = pnand %p1424_p8, %p1418_p3 }
 0x1c5   : > { %v1221_v6 = vpop.f32.mrb[16].mxu1 }
 0x1c6   : > { %732 = vst.msk [vmem:[%s1733_s16 + $0x8] sm:$0xff] %vm730_vm2, %v1221_v6  ;;  %v651_v7 = vpop.f32.mrb[17].mxu1 }
 0x1c7   : > { %731 = vst.msk [vmem:[%s1733_s16] sm:$0xff] %vm730_vm2, %v651_v7 }
 0x1c9   : > { %v1224_v8 = vpop.f32.mrb[18].mxu1 }
 0x1ca   : > { %734 = vst.msk [vmem:[%s1733_s16 + $0x18] sm:$0xff] %vm730_vm2, %v1224_v8  ;;  %v661_v9 = vpop.f32.mrb[19].mxu1 }
 0x1cb   : > { %733 = vst.msk [vmem:[%s1733_s16 + $0x10] sm:$0xff] %vm730_vm2, %v661_v9 }
 0x1cd   : > { %v1227_v10 = vpop.f32.mrb[20].mxu1 }
 0x1ce   : > { %736 = vst.msk [vmem:[%s1733_s16 + $0x28] sm:$0xff] %vm730_vm2, %v1227_v10  ;;  %v671_v11 = vpop.f32.mrb[21].mxu1 }
 0x1cf   : > { %735 = vst.msk [vmem:[%s1733_s16 + $0x20] sm:$0xff] %vm730_vm2, %v671_v11 }
 0x1d1   : > { %v1230_v12 = vpop.f32.mrb[22].mxu1 }
 0x1d2   : > { %738 = vst.msk [vmem:[%s1733_s16 + $0x38] sm:$0xff] %vm730_vm2, %v1230_v12  ;;  %v681_v13 = vpop.f32.mrb[23].mxu1 }
 0x1d3   : > { %737 = vst.msk [vmem:[%s1733_s16 + $0x30] sm:$0xff] %vm730_vm2, %v681_v13 }
 0x1d5   : > { %v1233_v14 = vpop.f32.mrb[24].mxu1 }
 0x1d6   : > { %740 = vst.msk [vmem:[%s1733_s16 + $0x48] sm:$0xff] %vm730_vm2, %v1233_v14  ;;  %v691_v15 = vpop.f32.mrb[25].mxu1 }
 0x1d7   : > { %739 = vst.msk [vmem:[%s1733_s16 + $0x40] sm:$0xff] %vm730_vm2, %v691_v15 }
 0x1d9   : > { %v1236_v16 = vpop.f32.mrb[26].mxu1 }
 0x1da   : > { %742 = vst.msk [vmem:[%s1733_s16 + $0x58] sm:$0xff] %vm730_vm2, %v1236_v16  ;;  %v701_v17 = vpop.f32.mrb[27].mxu1 }
 0x1db   : > { %741 = vst.msk [vmem:[%s1733_s16 + $0x50] sm:$0xff] %vm730_vm2, %v701_v17 }
 0x1dd   : > { %v1239_v18 = vpop.f32.mrb[28].mxu1 }
 0x1de   : > { %744 = vst.msk [vmem:[%s1733_s16 + $0x68] sm:$0xff] %vm730_vm2, %v1239_v18  ;;  %v711_v19 = vpop.f32.mrb[29].mxu1 }
 0x1df   : > { %743 = vst.msk [vmem:[%s1733_s16 + $0x60] sm:$0xff] %vm730_vm2, %v711_v19 }
 0x1e1   : > { %v1242_v20 = vpop.f32.mrb[30].mxu1 }
 0x1e2   : > { %746 = vst.msk [vmem:[%s1733_s16 + $0x78] sm:$0xff] %vm730_vm2, %v1242_v20  ;;  %v721_v21 = vpop.f32.mrb[31].mxu1 }
 0x1e3   : > { %745 = vst.msk [vmem:[%s1733_s16 + $0x70] sm:$0xff] %vm730_vm2, %v721_v21 }
 0x205   : > { %v814_v22 = vpop.f32.mrb[0].mxu0 }
 0x206   : > { %818 = vst [vmem:[%s256_s28] sm:$0xf] %v814_v22  ;;  %v1277_v23 = vpop.f32.mrb[1].mxu0 }
 0x207   : > { %1428 = shalt.err (!%p1425_p9)
}
 0x208   : > { %s1429_s11 = scalar_lea.hbm %s1774_s17, 64  ;;  %s1433_s16 = scalar_lea.hbm %s1820_s5, 128 }
 0x209   : > { %p1430_p10 = scmp.ne.s32.totalorder %s1774_s17, %s1429_s11  ;;  %p1434_p13 = scmp.lt.u32.totalorder %s1774_s17, %s1820_s5 }
 0x20a   : > { %p1435_p0 = scmp.lt.u32.totalorder %s1433_s16, %s1429_s11  ;;  %p1437_p2 = scmp.lt.u32.totalorder %s1429_s11, %s1774_s17 }
 0x20b   : > { %p1431_p11 = pnand %p1430_p10, %p1563_p5 }
 0x20c   : > { %p1436_p1 = por %p1435_p0, %p1434_p13 }
 0x20d   : > { %p1432_p12 = pneg %p1431_p11 }
 0x20e   : > { %p1438_p3 = por %p1437_p2, %p1436_p1 }
 0x210   : > { %p1439_p4 = pnand %p1438_p3, %p1432_p12 }
 0x212   : > { %1442 = shalt.err (!%p1439_p4)
}
 0x213   : > { %1339 = dma.vmem_to_hbm [thread:$0]  (%p1563_p5), %s1769_s19, 64, %s1774_s17, %s825_s18  }
 0x214 PF: > { %p1349_p7 = scmp.ge.s32.totalorder %s1481_s24, 2  ;;  %s875_s20 = sand.u32 1, %s1469_s21  }
 0x215   : > { %s876_s26 = scalar_lea.sflag [#allocation3], %s875_s20 }
 0x216   : > { %p1343_p8 = pnand %p1349_p7, %p1567_p6 }
 0x218   : > { %1460 = dma.done.wait (!%p1343_p8), %s876_s26, 1024  }
 0x219   : > { %1462 = vsyncadd (!%p1343_p8), %s876_s26, 4294966272  ;;  %s885_s10 = scalar_lea.sflag [#allocation5], %s875_s20 }
 0x21a   : > { %1464 = dma.done.wait (!%p1343_p8), %s885_s10, 64  }
 0x21b   : > { %1466 = vsyncadd (!%p1343_p8), %s885_s10, 4294967232  ;;  %p20_p5 = scmp.ge.s32.totalorder %s1550_s27, 4   ;;  %s1824_s21 = smov %s1473_s22 }
 0x21c   : > { %s1825_s22 = smov %s1477_s23  ;;  %s1826_s23 = smov %s1561_s30 }
 0x21d   : > { %s1827_s24 = smov %s1550_s27  ;;  %22 = sbr.rel (!%p20_p5) target bundleno = 5 (0x5), region = 100 }
 0x224   :  { %898 = vsyncpa [#allocation3], 1 }
 0x225   :  { %900 = vsyncpa [#allocation3 + $0x1], 1 }
 0x226   :  { %901 = vsyncpa [#allocation5], 1 }
 0x227   :  { %903 = vsyncpa [#allocation5 + $0x1], 1 }

</bundles_post_ra>
